<compile_context>
chip_gen: v7x
topology: tpu7x:2x2x1
jax: 0.10.0
libtpu: 0.0.40
codegen_flags: <defaults>
</compile_context>

<pallas_src>
import functools

import jax
import jax.numpy as jnp
from jax import lax
from jax.experimental import pallas as pl
from jax.experimental.pallas import tpu as pltpu


def _round_up(x, m):
    return ((x + m - 1) // m) * m


def _tpu_config():
    """Best-effort per-generation tuning constants."""
    vmem_phys = 128 * 1024 * 1024
    kind = ""
    try:
        kind = jax.devices()[0].device_kind.lower()
    except Exception:
        pass
    try:
        vmem_phys = int(pltpu.get_tpu_info().vmem_capacity_bytes)
    except Exception:
        pass
    # v7x-style chips: 2 TensorCores / chip, ~64 MiB VMEM per TC.
    two_tc = ("v7" in kind) or (vmem_phys <= 96 * 1024 * 1024)
    # MXU contraction tile: 128 on v5e and older, 256 on v6e/v7x.
    mxu_k = 128 if any(v in kind for v in ("v2", "v3", "v4", "v5")) else 256
    if two_tc:
        vmem_budget, vmem_limit_cap = 28 * 1024 * 1024, 52 * 1024 * 1024
    else:
        vmem_budget, vmem_limit_cap = 80 * 1024 * 1024, 110 * 1024 * 1024
    return {"two_tc": two_tc, "mxu_k": mxu_k,
            "vmem_budget": vmem_budget, "vmem_limit_cap": vmem_limit_cap}


def _const_spec(shape):
    # Grid-invariant operand: constant index_map, so the pipeline re-fetches it only
    # once per call.  (The default pipeline still allocates 2 buffers; the VMEM
    # estimate in quantizer_forward accounts for that.)
    n = len(shape)
    return pl.BlockSpec(shape, lambda i: (0,) * n)


# ----------------------------------------------------------------------------------
# Kernels
# ----------------------------------------------------------------------------------
def _quantizer_kernel_fused(x_ref, cbd_ref, cbg_ref, csq_ref, w_ref,
                            out_ref, tok_ref, oh_ref, *, Q, Kp, eps):
    """Block-diagonal fused path (H fits one MXU contraction tile)."""
    x = x_ref[...].astype(jnp.float32)                              # (tn, H)

    # -2 * x . c for every chunk/code in ONE MXU matmul (cbd is pre-scaled by -2,
    # block-diagonal over chunks, K lane-padded to Kp).
    dots = jnp.dot(x, cbd_ref[...], preferred_element_type=jnp.float32)  # (tn, Q*Kp)

    tn = x.shape[0]
    lane_iota = lax.broadcasted_iota(jnp.int32, (tn, Kp), 1)        # hoisted, reused
    idx_cols = []
    for i in range(Q):                                              # Q static -> unrolled
        lo = i * Kp
        # ||c||^2 - 2 x.c  (||x||^2 dropped: per-row constant -> same argmin).
        # Padded codes carry +inf in csq so they can never win.  Lane-aligned slices.
        s_i = csq_ref[:, lo:lo + Kp] + dots[:, lo:lo + Kp]          # (tn, Kp)
        m_i = jnp.min(s_i, axis=-1, keepdims=True)                  # (tn, 1)
        idx_i = jnp.min(jnp.where(s_i == m_i, lane_iota, Kp),
                        axis=-1, keepdims=True)                     # first-min tie-break
        idx_cols.append(idx_i)
        # One-hot written straight into the fused (tn, Q*Kp) scratch; lane-dense store.
        oh_ref[:, lo:lo + Kp] = (lane_iota == idx_i).astype(jnp.float32)

    tok_ref[...] = jnp.concatenate(idx_cols, axis=-1)               # single token store

    # Embedding lookup for all chunks in ONE matmul (block-diagonal gather matrix).
    q = jnp.dot(oh_ref[...], cbg_ref[...], preferred_element_type=jnp.float32)  # (tn, H)

    var = jnp.mean(q * q, axis=-1, keepdims=True)                   # RMSNorm (f32)
    out_ref[...] = q * lax.rsqrt(var + eps) * w_ref[...]


def _quantizer_kernel_chunked(x_ref, cbd_ref, cbg_ref, csq_ref, w_ref,
                              out_ref, tok_ref, *, Q, Kp, D, eps):
    """Per-chunk path (large H): Q (tn,D)x(D,Kp) matmuls, no Q-fold zero operands."""
    x = x_ref[...].astype(jnp.float32)                              # (tn, H)
    tn = x.shape[0]
    lane_iota = lax.broadcasted_iota(jnp.int32, (tn, Kp), 1)
    idx_cols, q_chunks = [], []
    for i in range(Q):
        xc = x[:, i * D:(i + 1) * D]                                # (tn, D)
        dots_i = jnp.dot(xc, cbd_ref[i],
                         preferred_element_type=jnp.float32)        # (tn, Kp), cbd pre-scaled by -2
        s_i = csq_ref[:, i * Kp:(i + 1) * Kp] + dots_i
        m_i = jnp.min(s_i, axis=-1, keepdims=True)
        idx_i = jnp.min(jnp.where(s_i == m_i, lane_iota, Kp),
                        axis=-1, keepdims=True)
        idx_cols.append(idx_i)
        oh_i = (lane_iota == idx_i).astype(jnp.float32)             # (tn, Kp)
        q_chunks.append(jnp.dot(oh_i, cbg_ref[i],
                                preferred_element_type=jnp.float32))  # (tn, D)
    tok_ref[...] = jnp.concatenate(idx_cols, axis=-1)
    q = jnp.concatenate(q_chunks, axis=-1)                          # (tn, H)
    var = jnp.mean(q * q, axis=-1, keepdims=True)
    out_ref[...] = q * lax.rsqrt(var + eps) * w_ref[...]


# ----------------------------------------------------------------------------------
# Wrapper
# ----------------------------------------------------------------------------------
def quantizer_forward(x, codebooks, norm_weight, *, eps,
                      tile_n=512, vmem_budget=None, fused=None):
    """x: (..., hidden); codebooks: (Q, K, D); norm_weight: (hidden,)."""
    orig_shape = x.shape
    H = x.shape[-1]
    Q, K, D = codebooks.shape
    assert Q * D == H
    Kp = _round_up(K, 128)                  # lane-align each chunk's code columns
    QKp = Q * Kp

    cfg = _tpu_config()
    if vmem_budget is None:
        vmem_budget = cfg["vmem_budget"]
    if fused is None:
        # Block-diagonal fusion only pays while H fits one MXU contraction tile;
        # beyond that the Q-fold zeros cost ~Qx MXU passes and Qx codebook VMEM.
        fused = H <= cfg["mxu_k"]

    xf = x.reshape(-1, H)                   # keep caller dtype; upcast inside kernel
    N = xf.shape[0]
    x_bytes = xf.dtype.itemsize

    def vmem_bytes(tile):
        io = 2 * tile * H * x_bytes + 2 * tile * H * 4 + 2 * tile * Q * 4
        if fused:
            cb = 2 * (2 * QKp * H * 4 + QKp * 4 + H * 4)     # invariants, double-buffered
            work = 2 * tile * QKp * 4                        # dots + one-hot scratch
        else:
            cb = 2 * (2 * Q * Kp * D * 4 + QKp * 4 + H * 4)
            work = 2 * tile * (Kp + H) * 4                   # per-chunk scores + q chunks
        return io + cb + work

    # ---- row tile: as big as the budget allows, sublane-aligned.  Only force a
    #      multi-step (even) grid when the chip has 2 TensorCores to shard across. ----
    tile = max(8, min(_round_up(tile_n, 8), _round_up(N, 8)))
    while tile > 8 and vmem_bytes(tile) > vmem_budget:
        tile = max(8, _round_up(tile // 2, 8))
    if cfg["two_tc"] and N > 16:
        steps = pl.cdiv(N, tile)
        if steps == 1:
            tile = max(8, _round_up(pl.cdiv(N, 2), 8))
        elif steps % 2 == 1:
            tile = max(8, _round_up(pl.cdiv(N, steps + 1), 8))
    grid_steps = pl.cdiv(N, tile)           # ragged last block is masked by Pallas

    # ---- codebook operands (built once, outside the kernel) ----
    cb = codebooks.astype(jnp.float32)
    cb_pad = jnp.pad(cb, ((0, 0), (0, Kp - K), (0, 0)))             # (Q, Kp, D), zero pads
    c_sq = jnp.sum(cb_pad * cb_pad, axis=-1)                        # (Q, Kp)
    c_sq = jnp.where(lax.broadcasted_iota(jnp.int32, (Q, Kp), 1) < K,
                     c_sq, jnp.inf)                                 # padded codes never win
    c_sq = c_sq.reshape(1, QKp)
    w = norm_weight.reshape(1, H).astype(jnp.float32)

    if fused:
        eye = jnp.eye(Q, dtype=jnp.float32)
        # cb_gather[(i,k),(j,d)] = cb[i,k,d] if i == j else 0  -> (Q*Kp, H)
        cb_gather = jnp.einsum("ikd,ij->ikjd", cb_pad, eye).reshape(QKp, H)
        cb_dist = -2.0 * cb_gather.T                                # (H, Q*Kp), pre-scaled
        cb_in = (cb_dist, cb_gather)
        cb_specs = [_const_spec((H, QKp)), _const_spec((QKp, H))]
        kernel = functools.partial(_quantizer_kernel_fused, Q=Q, Kp=Kp, eps=float(eps))
        scratch = [pltpu.VMEM((tile, QKp), jnp.float32)]            # fused one-hot buffer
    else:
        cb_dist = -2.0 * jnp.swapaxes(cb_pad, 1, 2)                 # (Q, D, Kp), pre-scaled
        cb_gather = cb_pad                                          # (Q, Kp, D)
        cb_in = (cb_dist, cb_gather)
        cb_specs = [_const_spec((Q, D, Kp)), _const_spec((Q, Kp, D))]
        kernel = functools.partial(_quantizer_kernel_chunked, Q=Q, Kp=Kp, D=D, eps=float(eps))
        scratch = []

    est = vmem_bytes(tile)
    vmem_limit = int(min(cfg["vmem_limit_cap"],
                         max(32 * 1024 * 1024, est + 8 * 1024 * 1024)))

    out, tok = pl.pallas_call(
        kernel,
        out_shape=(
            jax.ShapeDtypeStruct((N, H), jnp.float32),
            jax.ShapeDtypeStruct((N, Q), jnp.int32),
        ),
        grid=(grid_steps,),
        in_specs=[
            pl.BlockSpec((tile, H), lambda i: (i, 0)),              # x rows (caller dtype)
            *cb_specs,                                              # codebook operands
            _const_spec((1, QKp)),                                  # ||c||^2 (+inf pads)
            _const_spec((1, H)),                                    # RMSNorm weight
        ],
        out_specs=(
            pl.BlockSpec((tile, H), lambda i: (i, 0)),
            pl.BlockSpec((tile, Q), lambda i: (i, 0)),
        ),
        scratch_shapes=scratch,
        compiler_params=pltpu.CompilerParams(
            dimension_semantics=("parallel",),
            vmem_limit_bytes=vmem_limit,
        ),
    )(xf, *cb_in, c_sq, w)

    out = out.reshape(orig_shape[:-1] + (H,))
    tok = tok.reshape(orig_shape[:-1] + (Q,))
    return out, tok


class Quantizer:
    """JAX/Pallas port of the PyTorch Quantizer module (temporal + depth streams)."""

    def __init__(self, num_quantizers, codebook_size, hidden_size, rms_norm_eps, key):
        self.num_quantizers = num_quantizers
        self.codebook_size = codebook_size
        self.hidden_size = hidden_size
        self.chunk_size = hidden_size // num_quantizers
        self.rms_eps = rms_norm_eps
        k_t, k_d = jax.random.split(key)
        # nn.Embedding default init ~ N(0, 1); deterministic synthetic weights here.
        self.temporal_codebooks = jax.random.normal(
            k_t, (num_quantizers, codebook_size, self.chunk_size), jnp.float32)
        self.depth_codebooks = jax.random.normal(
            k_d, (num_quantizers, codebook_size, self.chunk_size), jnp.float32)
        # RMSNorm weights init to ones.
        self.temporal_norm_w = jnp.ones((hidden_size,), jnp.float32)
        self.depth_norm_w = jnp.ones((hidden_size,), jnp.float32)

    def __call__(self, x, stream_type="temporal"):
        if stream_type == "temporal":
            return quantizer_forward(x, self.temporal_codebooks,
                                     self.temporal_norm_w, eps=self.rms_eps)
        elif stream_type == "depth":
            return quantizer_forward(x, self.depth_codebooks,
                                     self.depth_norm_w, eps=self.rms_eps)
        else:
            raise ValueError(f"Unknown stream type: {stream_type}")


def _reference_forward(x, codebooks, w, eps):
    """Pure-JAX reference mirroring the PyTorch semantics (cdist -> argmin -> embed -> RMSNorm)."""
    Q, K, D = codebooks.shape
    x = x.astype(jnp.float32)
    xr = x.reshape(x.shape[:-1] + (Q, D))
    toks, quants = [], []
    for i in range(Q):
        diff = xr[..., i, None, :] - codebooks[i]
        dist = jnp.sqrt(jnp.sum(diff * diff, axis=-1))
        idx = jnp.argmin(dist, axis=-1)
        toks.append(idx)
        quants.append(codebooks[i][idx])
    q = jnp.concatenate(quants, axis=-1)
    tok = jnp.stack(toks, axis=-1).astype(jnp.int32)
    out = q * lax.rsqrt(jnp.mean(q * q, axis=-1, keepdims=True) + eps) * w
    return out, tok


if __name__ == "__main__":
    key = jax.random.PRNGKey(0)
    k_param, k_x = jax.random.split(key)

    B, T, H = 2, 8, 32
    NUM_Q, CODEBOOK = 4, 16
    EPS = 1e-6

    quantizer = Quantizer(NUM_Q, CODEBOOK, H, EPS, k_param)
    x = jax.random.normal(k_x, (B, T, H), jnp.float32)

    out_t, tok_t = quantizer(x, "temporal")
    out_d, tok_d = quantizer(x, "depth")
    jax.block_until_ready((out_t, tok_t, out_d, tok_d))

    ref_t, rtok_t = _reference_forward(x, quantizer.temporal_codebooks,
                                       quantizer.temporal_norm_w, EPS)
    ref_d, rtok_d = _reference_forward(x, quantizer.depth_codebooks,
                                       quantizer.depth_norm_w, EPS)
    assert jnp.allclose(out_t, ref_t, atol=1e-5, rtol=1e-5)
    assert jnp.allclose(out_d, ref_d, atol=1e-5, rtol=1e-5)
    assert jnp.array_equal(tok_t, rtok_t) and jnp.array_equal(tok_d, rtok_d)
    assert out_t.shape == (B, T, H) and tok_t.shape == (B, T, NUM_Q)

    # Ragged multi-step grid (N=21 rows, 8-row tiles -> masked tail block).
    x_odd = jax.random.normal(jax.random.PRNGKey(7), (3, 7, H), jnp.float32)
    out_o, tok_o = quantizer_forward(x_odd, quantizer.temporal_codebooks,
                                     quantizer.temporal_norm_w, eps=EPS, tile_n=8)
    ref_o, rtok_o = _reference_forward(x_odd, quantizer.temporal_codebooks,
                                       quantizer.temporal_norm_w, EPS)
    assert jnp.allclose(out_o, ref_o, atol=1e-5, rtol=1e-5)
    assert jnp.array_equal(tok_o, rtok_o)
    assert out_o.shape == (3, 7, H) and tok_o.shape == (3, 7, NUM_Q)

    # 2D input path (t, Q*D), single ragged block.
    x2d = jax.random.normal(jax.random.PRNGKey(3), (5, H), jnp.float32)
    out_2, tok_2 = quantizer(x2d, "depth")
    ref_2, rtok_2 = _reference_forward(x2d, quantizer.depth_codebooks,
                                       quantizer.depth_norm_w, EPS)
    assert jnp.allclose(out_2, ref_2, atol=1e-5, rtol=1e-5)
    assert jnp.array_equal(tok_2, rtok_2)

    # Per-chunk (non-fused) kernel path, as used automatically when H exceeds one MXU tile.
    out_c, tok_c = quantizer_forward(x, quantizer.temporal_codebooks,
                                     quantizer.temporal_norm_w, eps=EPS, fused=False)
    assert jnp.allclose(out_c, ref_t, atol=1e-5, rtol=1e-5)
    assert jnp.array_equal(tok_c, rtok_t)

    # bf16 input path: narrow dtype DMA'd, exact upcast inside the kernel.
    x_bf = x.astype(jnp.bfloat16)
    out_b, tok_b = quantizer(x_bf, "temporal")
    ref_b, rtok_b = _reference_forward(x_bf, quantizer.temporal_codebooks,
                                       quantizer.temporal_norm_w, EPS)
    assert jnp.allclose(out_b, ref_b, atol=1e-5, rtol=1e-5)
    assert jnp.array_equal(tok_b, rtok_b)

    jax.block_until_ready((out_o, out_2, out_c, out_b))
    print("KERNEL_OK")
</pallas_src>

<mosaic_0001>
module attributes {stable_mosaic.version = 11 : i64} {
  func.func @_quantizer_kernel_fused(%arg0: i32, %arg1: memref<16x32xf32, #tpu.memory_space<vmem>>, %arg2: memref<32x512xf32, #tpu.memory_space<vmem>>, %arg3: memref<512x32xf32, #tpu.memory_space<vmem>>, %arg4: memref<1x512xf32, #tpu.memory_space<vmem>>, %arg5: memref<1x32xf32, #tpu.memory_space<vmem>>, %arg6: memref<16x32xf32, #tpu.memory_space<vmem>>, %arg7: memref<16x4xi32, #tpu.memory_space<vmem>>, %arg8: memref<16x512xf32, #tpu.memory_space<vmem>>) attributes {dimension_semantics = [#tpu.dimension_semantics<parallel>], iteration_bounds = array<i64: 1>, scalar_prefetch = 0 : i64, scratch_operands = 1 : i64, tpu.core_type = #tpu.core_type<tc>, window_params = [{transform_indices = @transform_0, window_bounds = array<i64: 16, 32>}, {pipeline_mode = #tpu.pipeline_mode<synchronous>, transform_indices = @transform_1, window_bounds = array<i64: 32, 512>}, {pipeline_mode = #tpu.pipeline_mode<synchronous>, transform_indices = @transform_2, window_bounds = array<i64: 512, 32>}, {pipeline_mode = #tpu.pipeline_mode<synchronous>, transform_indices = @transform_3, window_bounds = array<i64: 1, 512>}, {pipeline_mode = #tpu.pipeline_mode<synchronous>, transform_indices = @transform_4, window_bounds = array<i64: 1, 32>}, {transform_indices = @transform_5, window_bounds = array<i64: 16, 32>}, {transform_indices = @transform_6, window_bounds = array<i64: 16, 4>}]} {
    %c0 = arith.constant 0 : index
    %c0_0 = arith.constant 0 : index
    %0 = vector.load %arg1[%c0, %c0_0] : memref<16x32xf32, #tpu.memory_space<vmem>>, vector<16x32xf32>
    %c0_1 = arith.constant 0 : index
    %c0_2 = arith.constant 0 : index
    %1 = vector.load %arg2[%c0_1, %c0_2] : memref<32x512xf32, #tpu.memory_space<vmem>>, vector<32x512xf32>
    %cst = arith.constant dense<0.000000e+00> : vector<16x512xf32>
    %2 = tpu.matmul %0, %1, %cst {dimension_numbers = #tpu.dot_dimension_numbers<[1], [0], [0], [1], [0, 0, 1, 1], [], []>} : vector<16x32xf32>, vector<32x512xf32>, vector<16x512xf32> -> vector<16x512xf32>
    %3 = tpu.iota {dimensions = array<i32: 1>} : vector<16x128xi32>
    %c0_3 = arith.constant 0 : index
    %c0_4 = arith.constant 0 : index
    %4 = vector.load %arg4[%c0_3, %c0_4] : memref<1x512xf32, #tpu.memory_space<vmem>>, vector<1x128xf32>
    %5 = vector.extract_strided_slice %2 {offsets = [0, 0], sizes = [16, 128], strides = [1, 1]} : vector<16x512xf32> to vector<16x128xf32>
    %6 = vector.broadcast %4 : vector<1x128xf32> to vector<16x128xf32>
    %7 = arith.addf %6, %5 : vector<16x128xf32>
    %cst_5 = arith.constant dense<0x7F800000> : vector<16xf32>
    %8 = vector.multi_reduction <minimumf>, %7, %cst_5 [1] : vector<16x128xf32> to vector<16xf32>
    %9 = vector.shape_cast %8 : vector<16xf32> to vector<16x1xf32>
    %10 = vector.broadcast %9 : vector<16x1xf32> to vector<16x128xf32>
    %11 = arith.cmpf oeq, %7, %10 : vector<16x128xf32>
    %c128_i32 = arith.constant 128 : i32
    %12 = vector.broadcast %c128_i32 : i32 to vector<16x128xi32>
    %13 = arith.select %11, %3, %12 : vector<16x128xi1>, vector<16x128xi32>
    %cst_6 = arith.constant dense<2147483647> : vector<16xi32>
    %14 = vector.multi_reduction <minsi>, %13, %cst_6 [1] : vector<16x128xi32> to vector<16xi32>
    %15 = vector.shape_cast %14 : vector<16xi32> to vector<16x1xi32>
    %16 = vector.broadcast %15 : vector<16x1xi32> to vector<16x128xi32>
    %17 = arith.cmpi eq, %3, %16 : vector<16x128xi32>
    %18 = arith.extui %17 : vector<16x128xi1> to vector<16x128xi32>
    %19 = arith.sitofp %18 : vector<16x128xi32> to vector<16x128xf32>
    %c0_7 = arith.constant 0 : index
    %c0_8 = arith.constant 0 : index
    %20 = vector.load %arg8[%c0_7, %c0_8] : memref<16x512xf32, #tpu.memory_space<vmem>>, vector<16x128xf32>
    tpu.vector_store %arg8[%c0_7, %c0_8], %19 {strides = array<i32>} : memref<16x512xf32, #tpu.memory_space<vmem>>, vector<16x128xf32>,
    %c0_9 = arith.constant 0 : index
    %c128 = arith.constant 128 : index
    %21 = vector.load %arg4[%c0_9, %c128] : memref<1x512xf32, #tpu.memory_space<vmem>>, vector<1x128xf32>
    %22 = vector.extract_strided_slice %2 {offsets = [0, 128], sizes = [16, 128], strides = [1, 1]} : vector<16x512xf32> to vector<16x128xf32>
    %23 = vector.broadcast %21 : vector<1x128xf32> to vector<16x128xf32>
    %24 = arith.addf %23, %22 : vector<16x128xf32>
    %cst_10 = arith.constant dense<0x7F800000> : vector<16xf32>
    %25 = vector.multi_reduction <minimumf>, %24, %cst_10 [1] : vector<16x128xf32> to vector<16xf32>
    %26 = vector.shape_cast %25 : vector<16xf32> to vector<16x1xf32>
    %27 = vector.broadcast %26 : vector<16x1xf32> to vector<16x128xf32>
    %28 = arith.cmpf oeq, %24, %27 : vector<16x128xf32>
    %c128_i32_11 = arith.constant 128 : i32
    %29 = vector.broadcast %c128_i32_11 : i32 to vector<16x128xi32>
    %30 = arith.select %28, %3, %29 : vector<16x128xi1>, vector<16x128xi32>
    %cst_12 = arith.constant dense<2147483647> : vector<16xi32>
    %31 = vector.multi_reduction <minsi>, %30, %cst_12 [1] : vector<16x128xi32> to vector<16xi32>
    %32 = vector.shape_cast %31 : vector<16xi32> to vector<16x1xi32>
    %33 = vector.broadcast %32 : vector<16x1xi32> to vector<16x128xi32>
    %34 = arith.cmpi eq, %3, %33 : vector<16x128xi32>
    %35 = arith.extui %34 : vector<16x128xi1> to vector<16x128xi32>
    %36 = arith.sitofp %35 : vector<16x128xi32> to vector<16x128xf32>
    %c0_13 = arith.constant 0 : index
    %c128_14 = arith.constant 128 : index
    %37 = vector.load %arg8[%c0_13, %c128_14] : memref<16x512xf32, #tpu.memory_space<vmem>>, vector<16x128xf32>
    tpu.vector_store %arg8[%c0_13, %c128_14], %36 {strides = array<i32>} : memref<16x512xf32, #tpu.memory_space<vmem>>, vector<16x128xf32>,
    %c0_15 = arith.constant 0 : index
    %c256 = arith.constant 256 : index
    %38 = vector.load %arg4[%c0_15, %c256] : memref<1x512xf32, #tpu.memory_space<vmem>>, vector<1x128xf32>
    %39 = vector.extract_strided_slice %2 {offsets = [0, 256], sizes = [16, 128], strides = [1, 1]} : vector<16x512xf32> to vector<16x128xf32>
    %40 = vector.broadcast %38 : vector<1x128xf32> to vector<16x128xf32>
    %41 = arith.addf %40, %39 : vector<16x128xf32>
    %cst_16 = arith.constant dense<0x7F800000> : vector<16xf32>
    %42 = vector.multi_reduction <minimumf>, %41, %cst_16 [1] : vector<16x128xf32> to vector<16xf32>
    %43 = vector.shape_cast %42 : vector<16xf32> to vector<16x1xf32>
    %44 = vector.broadcast %43 : vector<16x1xf32> to vector<16x128xf32>
    %45 = arith.cmpf oeq, %41, %44 : vector<16x128xf32>
    %c128_i32_17 = arith.constant 128 : i32
    %46 = vector.broadcast %c128_i32_17 : i32 to vector<16x128xi32>
    %47 = arith.select %45, %3, %46 : vector<16x128xi1>, vector<16x128xi32>
    %cst_18 = arith.constant dense<2147483647> : vector<16xi32>
    %48 = vector.multi_reduction <minsi>, %47, %cst_18 [1] : vector<16x128xi32> to vector<16xi32>
    %49 = vector.shape_cast %48 : vector<16xi32> to vector<16x1xi32>
    %50 = vector.broadcast %49 : vector<16x1xi32> to vector<16x128xi32>
    %51 = arith.cmpi eq, %3, %50 : vector<16x128xi32>
    %52 = arith.extui %51 : vector<16x128xi1> to vector<16x128xi32>
    %53 = arith.sitofp %52 : vector<16x128xi32> to vector<16x128xf32>
    %c0_19 = arith.constant 0 : index
    %c256_20 = arith.constant 256 : index
    %54 = vector.load %arg8[%c0_19, %c256_20] : memref<16x512xf32, #tpu.memory_space<vmem>>, vector<16x128xf32>
    tpu.vector_store %arg8[%c0_19, %c256_20], %53 {strides = array<i32>} : memref<16x512xf32, #tpu.memory_space<vmem>>, vector<16x128xf32>,
    %c0_21 = arith.constant 0 : index
    %c384 = arith.constant 384 : index
    %55 = vector.load %arg4[%c0_21, %c384] : memref<1x512xf32, #tpu.memory_space<vmem>>, vector<1x128xf32>
    %56 = vector.extract_strided_slice %2 {offsets = [0, 384], sizes = [16, 128], strides = [1, 1]} : vector<16x512xf32> to vector<16x128xf32>
    %57 = vector.broadcast %55 : vector<1x128xf32> to vector<16x128xf32>
    %58 = arith.addf %57, %56 : vector<16x128xf32>
    %cst_22 = arith.constant dense<0x7F800000> : vector<16xf32>
    %59 = vector.multi_reduction <minimumf>, %58, %cst_22 [1] : vector<16x128xf32> to vector<16xf32>
    %60 = vector.shape_cast %59 : vector<16xf32> to vector<16x1xf32>
    %61 = vector.broadcast %60 : vector<16x1xf32> to vector<16x128xf32>
    %62 = arith.cmpf oeq, %58, %61 : vector<16x128xf32>
    %c128_i32_23 = arith.constant 128 : i32
    %63 = vector.broadcast %c128_i32_23 : i32 to vector<16x128xi32>
    %64 = arith.select %62, %3, %63 : vector<16x128xi1>, vector<16x128xi32>
    %cst_24 = arith.constant dense<2147483647> : vector<16xi32>
    %65 = vector.multi_reduction <minsi>, %64, %cst_24 [1] : vector<16x128xi32> to vector<16xi32>
    %66 = vector.shape_cast %65 : vector<16xi32> to vector<16x1xi32>
    %67 = vector.broadcast %66 : vector<16x1xi32> to vector<16x128xi32>
    %68 = arith.cmpi eq, %3, %67 : vector<16x128xi32>
    %69 = arith.extui %68 : vector<16x128xi1> to vector<16x128xi32>
    %70 = arith.sitofp %69 : vector<16x128xi32> to vector<16x128xf32>
    %c0_25 = arith.constant 0 : index
    %c384_26 = arith.constant 384 : index
    %71 = vector.load %arg8[%c0_25, %c384_26] : memref<16x512xf32, #tpu.memory_space<vmem>>, vector<16x128xf32>
    tpu.vector_store %arg8[%c0_25, %c384_26], %70 {strides = array<i32>} : memref<16x512xf32, #tpu.memory_space<vmem>>, vector<16x128xf32>,
    %72 = tpu.concatenate %15, %32, %49, %66 in 1 : vector<16x1xi32>, vector<16x1xi32>, vector<16x1xi32>, vector<16x1xi32> -> vector<16x4xi32>
    %c0_27 = arith.constant 0 : index
    %c0_28 = arith.constant 0 : index
    %73 = vector.load %arg7[%c0_27, %c0_28] : memref<16x4xi32, #tpu.memory_space<vmem>>, vector<16x4xi32>
    tpu.vector_store %arg7[%c0_27, %c0_28], %72 {strides = array<i32>} : memref<16x4xi32, #tpu.memory_space<vmem>>, vector<16x4xi32>,
    %c0_29 = arith.constant 0 : index
    %c0_30 = arith.constant 0 : index
    %74 = vector.load %arg8[%c0_29, %c0_30] : memref<16x512xf32, #tpu.memory_space<vmem>>, vector<16x512xf32>
    %c0_31 = arith.constant 0 : index
    %c0_32 = arith.constant 0 : index
    %75 = vector.load %arg3[%c0_31, %c0_32] : memref<512x32xf32, #tpu.memory_space<vmem>>, vector<512x32xf32>
    %cst_33 = arith.constant dense<0.000000e+00> : vector<16x32xf32>
    %76 = tpu.matmul %74, %75, %cst_33 {dimension_numbers = #tpu.dot_dimension_numbers<[1], [0], [0], [1], [0, 0, 1, 1], [], []>} : vector<16x512xf32>, vector<512x32xf32>, vector<16x32xf32> -> vector<16x32xf32>
    %77 = arith.mulf %76, %76 : vector<16x32xf32>
    %cst_34 = arith.constant dense<0.000000e+00> : vector<16xf32>
    %78 = vector.multi_reduction <add>, %77, %cst_34 [1] : vector<16x32xf32> to vector<16xf32>
    %79 = vector.shape_cast %78 : vector<16xf32> to vector<16x1xf32>
    %cst_35 = arith.constant 3.200000e+01 : f32
    %80 = vector.broadcast %cst_35 : f32 to vector<16x1xf32>
    %81 = arith.divf %79, %80 : vector<16x1xf32>
    %cst_36 = arith.constant 9.99999997E-7 : f32
    %82 = vector.broadcast %cst_36 : f32 to vector<16x1xf32>
    %83 = arith.addf %81, %82 : vector<16x1xf32>
    %84 = math.rsqrt %83 : vector<16x1xf32>
    %85 = vector.broadcast %84 : vector<16x1xf32> to vector<16x32xf32>
    %86 = arith.mulf %76, %85 : vector<16x32xf32>
    %c0_37 = arith.constant 0 : index
    %c0_38 = arith.constant 0 : index
    %87 = vector.load %arg5[%c0_37, %c0_38] : memref<1x32xf32, #tpu.memory_space<vmem>>, vector<1x32xf32>
    %88 = vector.broadcast %87 : vector<1x32xf32> to vector<16x32xf32>
    %89 = arith.mulf %86, %88 : vector<16x32xf32>
    %c0_39 = arith.constant 0 : index
    %c0_40 = arith.constant 0 : index
    %90 = vector.load %arg6[%c0_39, %c0_40] : memref<16x32xf32, #tpu.memory_space<vmem>>, vector<16x32xf32>
    tpu.vector_store %arg6[%c0_39, %c0_40], %89 {strides = array<i32>} : memref<16x32xf32, #tpu.memory_space<vmem>>, vector<16x32xf32>,
    return
  }
  func.func @transform_0(%arg0: i32) -> (i32, i32) {
    %c0_i32 = arith.constant 0 : i32
    %c0_i32_0 = arith.constant 0 : i32
    return %arg0, %c0_i32 : i32, i32
  }
  func.func @transform_1(%arg0: i32) -> (i32, i32) {
    %c0_i32 = arith.constant 0 : i32
    %c0_i32_0 = arith.constant 0 : i32
    %c0_i32_1 = arith.constant 0 : i32
    return %c0_i32, %c0_i32_0 : i32, i32
  }
  func.func @transform_2(%arg0: i32) -> (i32, i32) {
    %c0_i32 = arith.constant 0 : i32
    %c0_i32_0 = arith.constant 0 : i32
    %c0_i32_1 = arith.constant 0 : i32
    return %c0_i32, %c0_i32_0 : i32, i32
  }
  func.func @transform_3(%arg0: i32) -> (i32, i32) {
    %c0_i32 = arith.constant 0 : i32
    %c0_i32_0 = arith.constant 0 : i32
    %c0_i32_1 = arith.constant 0 : i32
    return %c0_i32, %c0_i32_0 : i32, i32
  }
  func.func @transform_4(%arg0: i32) -> (i32, i32) {
    %c0_i32 = arith.constant 0 : i32
    %c0_i32_0 = arith.constant 0 : i32
    %c0_i32_1 = arith.constant 0 : i32
    return %c0_i32, %c0_i32_0 : i32, i32
  }
  func.func @transform_5(%arg0: i32) -> (i32, i32) {
    %c0_i32 = arith.constant 0 : i32
    %c0_i32_0 = arith.constant 0 : i32
    return %arg0, %c0_i32 : i32, i32
  }
  func.func @transform_6(%arg0: i32) -> (i32, i32) {
    %c0_i32 = arith.constant 0 : i32
    %c0_i32_0 = arith.constant 0 : i32
    return %arg0, %c0_i32 : i32, i32
  }
}

</mosaic_0001>

<bundles_post_ra>
// kernel: tpu_custom_call.1
= control target key start
LH: loop header
LB: loop body
LE: loop exit
PB: predicated region body
PF: predicated region fallthrough
CT: control target
= control target key end

     0   :  { %v912_v7 = vmov 0.0   ;;  %s1361_s0 = inlined_call_operand.vmem [shape: f32[16,32], index: 0, kind: input, shape index: {}]   ;;  %s1362_s1 = inlined_call_operand.vmem [shape: f32[32,512], index: 1, kind: input, shape index: {}]   ;;  %s1363_s2 = inlined_call_operand.vmem [shape: f32[512,32], index: 2, kind: input, shape index: {}]   ;;  %s1364_s3 = inlined_call_operand.vmem [shape: f32[1,512], index: 3, kind: input, shape index: {}]   ;;  %s1365_s4 = inlined_call_operand.vmem [shape: f32[1,32], index: 4, kind: input, shape index: {}]   ;;  %s1366_s5 = inlined_call_operand.hbm [shape: f32[16,32], index: 5, kind: output, shape index: {0}]   ;;  %s1367_s6 = inlined_call_operand.vmem [shape: s32[16,4], index: 6, kind: output, shape index: {1}]  }
   0x1   :  { %v26_v0 = vld [vmem:[%s1362_s1 + $0x8] sm:$0xff]  ;;  %v25_v2 = vld [vmem:[%s1362_s1] sm:$0xff]  ;;  %v28_v5 = vld [vmem:[%s1362_s1 + $0x18] sm:$0xff]  ;;  %112 = vmatprep.mubr.f32.mxu0 %v912_v7  ;;  %189 = vmatprep.mubr.f32.mxu1 %v912_v7 }
   0x2   :  { %v30_v1 = vld [vmem:[%s1362_s1 + $0x28] sm:$0xff]  ;;  %v29_v4 = vld [vmem:[%s1362_s1 + $0x20] sm:$0xff]  ;;  %v32_v6 = vld [vmem:[%s1362_s1 + $0x38] sm:$0xff] }
   0x3   :  { %v799_v3 = vpack.c.bf16 %v30_v1, %v26_v0  ;;  %v801_v8 = vpack.c.bf16 %v29_v4, %v25_v2  ;;  %v807_v9 = vpack.c.bf16 %v32_v6, %v28_v5  ;;  %v34_v10 = vld [vmem:[%s1362_s1 + $0x48] sm:$0xff]  ;;  %v27_v12 = vld [vmem:[%s1362_s1 + $0x10] sm:$0xff]  ;;  %v33_v15 = vld [vmem:[%s1362_s1 + $0x40] sm:$0xff] }
   0x4   :  { %v38_v11 = vld [vmem:[%s1362_s1 + $0x68] sm:$0xff]  ;;  %v31_v14 = vld [vmem:[%s1362_s1 + $0x30] sm:$0xff]  ;;  %v37_v16 = vld [vmem:[%s1362_s1 + $0x60] sm:$0xff] }
   0x5   :  { %800 = vmatprep.subr.bf16.mxu0 %v799_v3  ;;  %v803_v13 = vpack.c.bf16 %v38_v11, %v34_v10  ;;  %808 = vmatprep.subr.bf16.mxu1 %v807_v9  ;;  %v809_v17 = vpack.c.bf16 %v31_v14, %v27_v12  ;;  %v805_v18 = vpack.c.bf16 %v37_v16, %v33_v15  ;;  %v36_v19 = vld [vmem:[%s1362_s1 + $0x58] sm:$0xff]  ;;  %v35_v22 = vld [vmem:[%s1362_s1 + $0x50] sm:$0xff] }
   0x6   :  { %802 = vmatpush1.bf16.msra.mxu0 %v801_v8  ;;  %v40_v20 = vld [vmem:[%s1362_s1 + $0x78] sm:$0xff]  ;;  %v39_v23 = vld [vmem:[%s1362_s1 + $0x70] sm:$0xff] }
   0x7   :  { %804 = vmatprep.subr.bf16.mxu0 %v803_v13  ;;  %v811_v21 = vpack.c.bf16 %v40_v20, %v36_v19  ;;  %810 = vmatpush1.bf16.msra.mxu1 %v809_v17  ;;  %v813_v24 = vpack.c.bf16 %v39_v23, %v35_v22 }
   0x8   :  { %12 = vsyncpa [#allocation4], 0  ;;  %v23_v25 = vld [vmem:[%s1361_s0] sm:$0xff]  ;;  %vm41_vm0 = vcmask 261120   ;;  %v24_v26 = vld [vmem:[%s1361_s0 + $0x8] sm:$0xff]  ;;  %v202_v47 = vlaneseq  ;;  %s914_s13 = smov [#allocation3]  }
   0x9   :  { %812 = vmatprep.subr.bf16.mxu1 %v811_v21  ;;  %v702_v27 = vld [vmem:[%s1364_s3] ss:$0 sm:$0xff]  ;;  %v705_v28 = vld [vmem:[%s1364_s3 + $0x1] ss:$0 sm:$0xff]  ;;  %v708_v30 = vld [vmem:[%s1364_s3 + $0x2] ss:$0 sm:$0xff] }
   0xa   :  { %806 = vmatpush1.bf16.msra.mxu0 %v805_v18  ;;  %v711_v33 = vld [vmem:[%s1364_s3 + $0x3] ss:$0 sm:$0xff]  ;;  %v1022_v48 = vand.u32 127, %v202_v47  ;;  %v453_v18 = vld [vmem:[%s1363_s2 + $0x88] sm:$0xff]  ;;  %v454_v22 = vld [vmem:[%s1363_s2 + $0x90] sm:$0xff]  ;;  %s683_s0 = sshll.u32 %s914_s13, 4  ;;  %s684_s0 = int_to_ptr.vmem [resolvable:$true] %s683_s0 }
   0xb   :  { %814 = vmatpush1.bf16.msra.mxu1 %v813_v24  ;;  %v452_v17 = vld [vmem:[%s1363_s2 + $0x80] sm:$0xff]  ;;  %v437_v21 = vld [vmem:[%s1363_s2 + $0x8] sm:$0xff]  ;;  %v455_v23 = vld [vmem:[%s1363_s2 + $0x98] sm:$0xff]  ;;  %s888_s14 = scalar_lea.vmem %s684_s0, 256  ;;  %p893_p1 = scmp.lt.s32.totalorder %s684_s0, %s684_s0 }
   0xc   :  { %v436_v19 = vld [vmem:[%s1363_s2] sm:$0xff]  ;;  %v815_v20 = vpack.c.bf16 %v453_v18, %v452_v17  ;;  %v459_v47 = vld [vmem:[%s1363_s2 + $0xb8] sm:$0xff]  ;;  %p889_p0 = scmp.ne.s32.totalorder %s684_s0, %s888_s14  ;;  %p894_p2 = scmp.lt.s32.totalorder %s888_s14, %s888_s14 }
   0xd   :  { %698 = vmatmul.mubr.msk.f32.vlgmr.msra.gmra.mrb[0].mxu0 %vm41_vm0, %v23_v25  ;;  %v817_v24 = vpack.c.bf16 %v437_v21, %v436_v19  ;;  %v475_v17 = vld [vmem:[%s1363_s2 + $0x138] sm:$0xff]  ;;  %v492_v19 = vld [vmem:[%s1363_s2 + $0x1c0] sm:$0xff] }
   0xe   :  { %118 = vmatprep.mubr.f32.mxu0 %v912_v7  ;;  %700 = vmatmul.mubr.msk.f32.vlgmr.msra.gmra.mrb[0].mxu1 %vm41_vm0, %v23_v25  ;;  %v819_v25 = vpack.c.bf16 %v455_v23, %v454_v22  ;;  %v444_v21 = vld [vmem:[%s1363_s2 + $0x40] sm:$0xff]  ;;  %v445_v22 = vld [vmem:[%s1363_s2 + $0x48] sm:$0xff]  ;;  %p895_p3 = por %p894_p2, %p893_p1 }
   0xf   :  { %195 = vmatprep.mubr.f32.mxu1 %v912_v7  ;;  %816 = vmatprep.subr.bf16.mxu0 %v815_v20  ;;  %v493_v23 = vld [vmem:[%s1363_s2 + $0x1c8] sm:$0xff] }
  0x10   :  { %818 = vmatpush3.bf16.msra.mxu0 %v817_v24  ;;  %p896_p4 = pnand %p895_p3, %p889_p0 }
  0x11   :  { %699 = vmatmul.mubr.msk.f32.gmra.mrb[2].mxu0 %vm41_vm0, %v24_v26  ;;  %820 = vmatprep.subr.bf16.mxu0 %v819_v25  ;;  %v462_v25 = vld [vmem:[%s1363_s2 + $0xd0] sm:$0xff] }
  0x12   :  { %701 = vmatmul.mubr.msk.f32.gmra.mrb[2].mxu1 %vm41_vm0, %v24_v26  ;;  %v484_v26 = vld [vmem:[%s1363_s2 + $0x180] sm:$0xff] }
  0xe0   :  { %v114_v29 = vpop.f32.mrb[0].mxu0 }
  0xe1   :  { %v211_v31 = vadd.f32 %v702_v27, %v114_v29  ;;  %v116_v32 = vpop.f32.mrb[1].mxu0  ;;  %v191_v35 = vpop.f32.mrb[0].mxu1 }
  0xe2   :  { %v264_v34 = vadd.f32 %v705_v28, %v116_v32  ;;  %v317_v36 = vadd.f32 %v708_v30, %v191_v35  ;;  %v193_v37 = vpop.f32.mrb[1].mxu1  ;;  %v469_v32 = vld [vmem:[%s1363_s2 + $0x108] sm:$0xff]  ;;  %v456_v35 = vld [vmem:[%s1363_s2 + $0xa0] sm:$0xff] }
  0xe3   :  { %213 = vmin.xlane.f32.xlu1 %v211_v31  ;;  %v370_v38 = vadd.f32 %v711_v33, %v193_v37  ;;  %v486_v37 = vld [vmem:[%s1363_s2 + $0x190] sm:$0xff] }
  0xe4   :  { %266 = vmin.xlane.f32.xlu0 %v264_v34  ;;  %v120_v39 = vpop.f32.mrb[2].mxu0 }
  0xe5   :  { %v122_v40 = vpop.f32.mrb[3].mxu0  ;;  %v197_v41 = vpop.f32.mrb[2].mxu1  ;;  %v212_v46 = vadd.f32 %v702_v27, %v120_v39  ;;  %v485_v27 = vld [vmem:[%s1363_s2 + $0x188] sm:$0xff]  ;;  %v487_v39 = vld [vmem:[%s1363_s2 + $0x198] sm:$0xff] }
  0xe6   :  { %v199_v42 = vpop.f32.mrb[3].mxu1  ;;  %v265_v44 = vadd.f32 %v705_v28, %v122_v40  ;;  %v318_v45 = vadd.f32 %v708_v30, %v197_v41  ;;  %v438_v28 = vld [vmem:[%s1363_s2 + $0x10] sm:$0xff]  ;;  %v847_v29 = vpack.c.bf16 %v485_v27, %v484_v26  ;;  %v439_v30 = vld [vmem:[%s1363_s2 + $0x18] sm:$0xff]  ;;  %v440_v40 = vld [vmem:[%s1363_s2 + $0x20] sm:$0xff]  ;;  %v863_v27 = vpack.c.bf16 %v493_v23, %v492_v19 }
  0xe7   :  { %319 = vmin.xlane.f32.xlu1 %v317_v36  ;;  %v371_v43 = vadd.f32 %v711_v33, %v199_v42  ;;  %v821_v33 = vpack.c.bf16 %v439_v30, %v438_v28  ;;  %v441_v41 = vld [vmem:[%s1363_s2 + $0x28] sm:$0xff]  ;;  %v851_v42 = vpack.c.bf16 %v487_v39, %v486_v37  ;;  %v463_v26 = vld [vmem:[%s1363_s2 + $0xd8] sm:$0xff]  ;;  %v476_v28 = vld [vmem:[%s1363_s2 + $0x140] sm:$0xff]  ;;  %v833_v30 = vpack.c.bf16 %v445_v22, %v444_v21 }
  0xe8   :  { %372 = vmin.xlane.f32.xlu0 %v370_v38  ;;  %848 = vmatprep.subr.bf16.mxu1 %v847_v29  ;;  %v477_v29 = vld [vmem:[%s1363_s2 + $0x148] sm:$0xff]  ;;  %v496_v19 = vld [vmem:[%s1363_s2 + $0x1e0] sm:$0xff]  ;;  %v450_v22 = vld [vmem:[%s1363_s2 + $0x70] sm:$0xff] }
  0xe9   :  { %822 = vmatpush3.bf16.msra.mxu0 %v821_v33  ;;  %v447_v33 = vld [vmem:[%s1363_s2 + $0x58] sm:$0xff]  ;;  %v497_v21 = vld [vmem:[%s1363_s2 + $0x1e8] sm:$0xff] }
  0xea   :  { %v451_v23 = vld [vmem:[%s1363_s2 + $0x78] sm:$0xff] }
  0xeb   :  { %374 = vmin.xlane.f32.xlu1 %v371_v43 }
  0xec   :  { %268 = vmin.xlane.f32.xlu0 %v265_v44 }
  0xef   :  { %321 = vmin.xlane.f32.xlu1 %v318_v45 }
  0xf0   :  { %215 = vmin.xlane.f32.xlu0 %v212_v46 }
 0x170   :  { %v214_v49 = vpop.xlane.xlu1 %213 }
 0x171   :  { %vm217_vm1 = vcmp.eq.f32.partialorder %v211_v31, %v214_v49  ;;  %v267_v50 = vpop.xlane.xlu0 %266  ;;  %v468_v31 = vld [vmem:[%s1363_s2 + $0x100] sm:$0xff] }
 0x172   :  { %v1025_v51 = vsel %vm217_vm1, %v1022_v48, 128  ;;  %vm270_vm2 = vcmp.eq.f32.partialorder %v264_v34, %v267_v50  ;;  %v849_v34 = vpack.c.bf16 %v469_v32, %v468_v31  ;;  %v488_v49 = vld [vmem:[%s1363_s2 + $0x1a0] sm:$0xff]  ;;  %v489_v50 = vld [vmem:[%s1363_s2 + $0x1a8] sm:$0xff]  ;;  %v835_v31 = vpack.c.bf16 %v463_v26, %v462_v25  ;;  %v446_v32 = vld [vmem:[%s1363_s2 + $0x50] sm:$0xff] }
 0x173   :  { %v1028_v52 = vsel %vm270_vm2, %v1022_v48, 128  ;;  %v222_v53 = vshra.s32 %v1025_v51, 16  ;;  %v845_v25 = vpack.c.bf16 %v451_v23, %v450_v22  ;;  %v480_v26 = vld [vmem:[%s1363_s2 + $0x160] sm:$0xff]  ;;  %vm416_vm2 = vcmask 7168  }
 0x174   :  { %v320_v54 = vpop.xlane.xlu1 %319  ;;  %v275_v57 = vshra.s32 %v1028_v52, 16  ;;  %850 = vmatpush3.bf16.msra.mxu1 %v849_v34  ;;  %v865_v34 = vpack.c.bf16 %v477_v29, %v476_v28  ;;  %v274_v37 = vand.u32 65535, %v1028_v52  ;;  %v498_v29 = vld [vmem:[%s1363_s2 + $0x1f0] sm:$0xff] }
 0x175   :  { %vm323_vm3 = vcmp.eq.f32.partialorder %v317_v36, %v320_v54  ;;  %v373_v55 = vpop.xlane.xlu0 %372  ;;  %v1031_v56 = vcvt.s32.f32 %v222_v53  ;;  %v457_v36 = vld [vmem:[%s1363_s2 + $0xa8] sm:$0xff]  ;;  %852 = vmatprep.subr.bf16.mxu1 %v851_v42  ;;  %v825_v53 = vpack.c.bf16 %v441_v41, %v440_v40  ;;  %v855_v54 = vpack.c.bf16 %v489_v50, %v488_v49 }
 0x176   :  { %v1035_v58 = vsel %vm323_vm3, %v1022_v48, 128  ;;  %vm376_vm4 = vcmp.eq.f32.partialorder %v370_v38, %v373_v55  ;;  %v1044_v0 = vcvt.s32.f32 %v275_v57  ;;  %v823_v38 = vpack.c.bf16 %v457_v36, %v456_v35  ;;  %v442_v55 = vld [vmem:[%s1363_s2 + $0x30] sm:$0xff]  ;;  %v472_v57 = vld [vmem:[%s1363_s2 + $0x120] sm:$0xff] }
 0x177   :  { %v1038_v59 = vsel %vm376_vm4, %v1022_v48, 128  ;;  %225 = vmin.xlane.f32.xlu0 %v1031_v56  ;;  %v328_v60 = vshra.s32 %v1035_v58, 16  ;;  %v837_v35 = vpack.c.bf16 %v447_v33, %v446_v32  ;;  %v221_v36 = vand.u32 65535, %v1025_v51  ;;  %v483_v32 = vld [vmem:[%s1363_s2 + $0x178] sm:$0xff] }
 0x178   :  { %v375_v61 = vpop.xlane.xlu1 %374  ;;  %v381_v1 = vshra.s32 %v1038_v59, 16  ;;  %824 = vmatprep.subr.bf16.mxu0 %v823_v38  ;;  %v327_v38 = vand.u32 65535, %v1035_v58  ;;  %v380_v42 = vand.u32 65535, %v1038_v59  ;;  %v276_v51 = vcvt.s32.f32 %v274_v37 }
 0x179   :  { %vm377_vm5 = vcmp.eq.f32.partialorder %v371_v43, %v375_v61  ;;  %v269_v62 = vpop.xlane.xlu0 %268  ;;  %v1042_v63 = vcvt.s32.f32 %v328_v60  ;;  %v470_v43 = vld [vmem:[%s1363_s2 + $0x110] sm:$0xff]  ;;  %v443_v61 = vld [vmem:[%s1363_s2 + $0x38] sm:$0xff]  ;;  %826 = vmatpush3.bf16.msra.mxu0 %v825_v53  ;;  %v223_v40 = vcvt.s32.f32 %v221_v36  ;;  %vm419_vm3 = vcmask 15360  }
 0x17a   :  { %v1048_v2 = vsel %vm377_vm5, %v1022_v48, 128  ;;  %vm271_vm6 = vcmp.eq.f32.partialorder %v265_v44, %v269_v62  ;;  %v1056_v7 = vcvt.s32.f32 %v381_v1  ;;  %v471_v44 = vld [vmem:[%s1363_s2 + $0x118] sm:$0xff]  ;;  %v473_v62 = vld [vmem:[%s1363_s2 + $0x128] sm:$0xff]  ;;  %v460_v1 = vld [vmem:[%s1363_s2 + $0xc0] sm:$0xff]  ;;  %v829_v18 = vpack.c.bf16 %v443_v61, %v442_v55 }
 0x17b   :  { %v1051_v3 = vsel %vm271_vm6, %v1022_v48, 128  ;;  %331 = vmin.xlane.f32.xlu1 %v1042_v63  ;;  %278 = vmin.xlane.f32.xlu0 %v1044_v0  ;;  %v395_v8 = vshra.s32 %v1048_v2, 16  ;;  %v394_v59 = vand.u32 65535, %v1048_v2  ;;  %v465_v61 = vld [vmem:[%s1363_s2 + $0xe8] sm:$0xff]  ;;  %vm422_vm6 = vcmask 23552  }
 0x17c   :  { %v322_v4 = vpop.xlane.xlu1 %321  ;;  %v289_v5 = vshra.s32 %v1051_v3, 16  ;;  %v288_v52 = vand.u32 65535, %v1051_v3 }
 0x17d   :  { %vm324_vm7 = vcmp.eq.f32.partialorder %v318_v45, %v322_v4  ;;  %v216_v6 = vpop.xlane.xlu0 %215  ;;  %v1070_v13 = vcvt.s32.f32 %v395_v8  ;;  %v458_v45 = vld [vmem:[%s1363_s2 + $0xb0] sm:$0xff]  ;;  %v857_v4 = vpack.c.bf16 %v473_v62, %v472_v57  ;;  %v491_v8 = vld [vmem:[%s1363_s2 + $0x1b8] sm:$0xff] }
 0x17e   :  { %v1060_v9 = vsel %vm324_vm7, %v1022_v48, 128  ;;  %vm218_vm8 = vcmp.eq.f32.partialorder %v212_v46, %v216_v6  ;;  %v1062_v10 = vcvt.s32.f32 %v289_v5  ;;  %v853_v46 = vpack.c.bf16 %v471_v44, %v470_v43  ;;  %v461_v5 = vld [vmem:[%s1363_s2 + $0xc8] sm:$0xff]  ;;  %v490_v6 = vld [vmem:[%s1363_s2 + $0x1b0] sm:$0xff]  ;;  %v495_v62 = vld [vmem:[%s1363_s2 + $0x1d8] sm:$0xff] }
 0x17f   :  { %v1065_v11 = vsel %vm218_vm8, %v1022_v48, 128  ;;  %384 = vmin.xlane.f32.xlu1 %v1056_v7  ;;  %v342_v14 = vshra.s32 %v1060_v9, 16  ;;  %v827_v60 = vpack.c.bf16 %v459_v47, %v458_v45  ;;  %v831_v20 = vpack.c.bf16 %v461_v5, %v460_v1  ;;  %v448_v1 = vld [vmem:[%s1363_s2 + $0x60] sm:$0xff] }
 0x180   :  { %292 = vmin.xlane.f32.xlu0 %v1062_v10  ;;  %v236_v12 = vshra.s32 %v1065_v11, 16  ;;  %854 = vmatpush3.bf16.msra.mxu1 %v853_v46  ;;  %v329_v45 = vcvt.s32.f32 %v327_v38  ;;  %v382_v47 = vcvt.s32.f32 %v380_v42  ;;  %v235_v49 = vand.u32 65535, %v1065_v11 }
 0x181   :  { %v1077_v16 = vcvt.s32.f32 %v342_v14  ;;  %856 = vmatprep.subr.bf16.mxu1 %v855_v54  ;;  %v474_v14 = vld [vmem:[%s1363_s2 + $0x130] sm:$0xff]  ;;  %828 = vmatprep.subr.bf16.mxu0 %v827_v60  ;;  %v341_v53 = vand.u32 65535, %v1060_v9  ;;  %v396_v54 = vcvt.s32.f32 %v394_v59  ;;  %v464_v60 = vld [vmem:[%s1363_s2 + $0xe0] sm:$0xff]  ;;  %vm425_vm7 = vcmask 31744  }
 0x182   :  { %v1073_v15 = vcvt.s32.f32 %v236_v12  ;;  %v859_v12 = vpack.c.bf16 %v491_v8, %v490_v6  ;;  %v861_v24 = vpack.c.bf16 %v475_v17, %v474_v14  ;;  %830 = vmatpush3.bf16.msra.mxu0 %v829_v18  ;;  %v237_v11 = vcvt.s32.f32 %v235_v49  ;;  %v466_v17 = vld [vmem:[%s1363_s2 + $0xf0] sm:$0xff]  ;;  %v467_v18 = vld [vmem:[%s1363_s2 + $0xf8] sm:$0xff] }
 0x183   :  { %398 = vmin.xlane.f32.xlu1 %v1070_v13  ;;  %832 = vmatprep.subr.bf16.mxu0 %v831_v20  ;;  %v343_v9 = vcvt.s32.f32 %v341_v53  ;;  %v843_v20 = vpack.c.bf16 %v467_v18, %v466_v17 }
 0x184   :  { %239 = vmin.xlane.f32.xlu0 %v1073_v15  ;;  %858 = vmatpush3.bf16.msra.mxu1 %v857_v4  ;;  %v449_v4 = vld [vmem:[%s1363_s2 + $0x68] sm:$0xff] }
 0x185   :  { %860 = vmatprep.subr.bf16.mxu1 %v859_v12  ;;  %v841_v8 = vpack.c.bf16 %v449_v4, %v448_v1  ;;  %v479_v12 = vld [vmem:[%s1363_s2 + $0x158] sm:$0xff] }
 0x186   :  { %834 = vmatpush3.bf16.msra.mxu0 %v833_v30  ;;  %v499_v30 = vld [vmem:[%s1363_s2 + $0x1f8] sm:$0xff] }
 0x187   :  { %345 = vmin.xlane.f32.xlu1 %v1077_v16  ;;  %836 = vmatprep.subr.bf16.mxu0 %v835_v31  ;;  %v482_v31 = vld [vmem:[%s1363_s2 + $0x170] sm:$0xff]  ;;  %v875_v33 = vpack.c.bf16 %v499_v30, %v498_v29 }
 0x188   :  { %862 = vmatpush3.bf16.msra.mxu1 %v861_v24  ;;  %v871_v24 = vpack.c.bf16 %v497_v21, %v496_v19 }
 0x189   :  { %864 = vmatprep.subr.bf16.mxu1 %v863_v27  ;;  %v481_v27 = vld [vmem:[%s1363_s2 + $0x168] sm:$0xff] }
 0x18a   :  { %838 = vmatpush3.bf16.msra.mxu0 %v837_v35  ;;  %v873_v28 = vpack.c.bf16 %v481_v27, %v480_v26 }
 0x18c   :  { %866 = vmatpush3.bf16.msra.mxu1 %v865_v34  ;;  %v877_v34 = vpack.c.bf16 %v483_v32, %v482_v31 }
 0x204   :  { %v1215_v39 = vpop.xlane.xlu0 %225 }
 0x205   :  { %vm227_vm9 = vcmp.eq.f32.partialorder %v1031_v56, %v1215_v39  ;;  %v232_v35 = vcvt.f32.s32 %v1215_v39 }
 0x206   :  { %v228_v41 = vsel %vm227_vm9, %v223_v40, inf }
 0x207   :  { %229 = vmin.xlane.f32.xlu0 %v228_v41  ;;  %v233_v41 = vshll.u32 %v232_v35, 16 }
 0x208   :  { %v1220_v43 = vpop.xlane.xlu1 %331  ;;  %v1222_v44 = vpop.xlane.xlu0 %278 }
 0x209   :  { %vm333_vm10 = vcmp.eq.f32.partialorder %v1042_v63, %v1220_v43  ;;  %vm280_vm11 = vcmp.eq.f32.partialorder %v1044_v0, %v1222_v44  ;;  %v290_v63 = vcvt.s32.f32 %v288_v52  ;;  %v338_v37 = vcvt.f32.s32 %v1220_v43 }
 0x20a   :  { %v334_v58 = vsel %vm333_vm10, %v329_v45, inf  ;;  %v281_v56 = vsel %vm280_vm11, %v276_v51, inf  ;;  %v285_v38 = vcvt.f32.s32 %v1222_v44 }
 0x20b   :  { %335 = vmin.xlane.f32.xlu1 %v334_v58  ;;  %282 = vmin.xlane.f32.xlu0 %v281_v56  ;;  %v339_v58 = vshll.u32 %v338_v37, 16 }
 0x20c   :  { %v1230_v46 = vpop.xlane.xlu1 %384  ;;  %v286_v56 = vshll.u32 %v285_v38, 16 }
 0x20d   :  { %v1233_v50 = vpop.xlane.xlu0 %292  ;;  %vm386_vm12 = vcmp.eq.f32.partialorder %v1056_v7, %v1230_v46  ;;  %v391_v42 = vcvt.f32.s32 %v1230_v46 }
 0x20e   :  { %v387_v3 = vsel %vm386_vm12, %v382_v47, inf  ;;  %vm294_vm13 = vcmp.eq.f32.partialorder %v1062_v10, %v1233_v50  ;;  %v299_v45 = vcvt.f32.s32 %v1233_v50 }
 0x20f   :  { %388 = vmin.xlane.f32.xlu1 %v387_v3  ;;  %v295_v0 = vsel %vm294_vm13, %v290_v63, inf  ;;  %v392_v43 = vshll.u32 %v391_v42, 16 }
 0x210   :  { %v1240_v2 = vpop.xlane.xlu1 %398  ;;  %296 = vmin.xlane.f32.xlu0 %v295_v0  ;;  %v300_v3 = vshll.u32 %v299_v45, 16 }
 0x211   :  { %v1242_v55 = vpop.xlane.xlu0 %239  ;;  %vm400_vm14 = vcmp.eq.f32.partialorder %v1070_v13, %v1240_v2  ;;  %v494_v13 = vld [vmem:[%s1363_s2 + $0x1d0] sm:$0xff]  ;;  %v405_v44 = vcvt.f32.s32 %v1240_v2 }
 0x212   :  { %v401_v7 = vsel %vm400_vm14, %v396_v54, inf  ;;  %vm241_vm15 = vcmp.eq.f32.partialorder %v1073_v15, %v1242_v55  ;;  %v839_v15 = vpack.c.bf16 %v465_v61, %v464_v60  ;;  %v867_v6 = vpack.c.bf16 %v495_v62, %v494_v13 }
 0x213   :  { %402 = vmin.xlane.f32.xlu1 %v401_v7  ;;  %v242_v10 = vsel %vm241_vm15, %v237_v11, inf  ;;  %v246_v46 = vcvt.f32.s32 %v1242_v55  ;;  %v406_v2 = vshll.u32 %v405_v44, 16 }
 0x214   :  { %v1248_v57 = vpop.xlane.xlu1 %345  ;;  %243 = vmin.xlane.f32.xlu0 %v242_v10  ;;  %840 = vmatprep.subr.bf16.mxu0 %v839_v15  ;;  %v913_v10 = vmov 1.0  }
 0x215   :  { %vm347_vm1 = vcmp.eq.f32.partialorder %v1077_v16, %v1248_v57  ;;  %v478_v16 = vld [vmem:[%s1363_s2 + $0x150] sm:$0xff]  ;;  %868 = vmatprep.subr.bf16.mxu1 %v867_v6  ;;  %842 = vmatpush3.bf16.msra.mxu0 %v841_v8  ;;  %v352_v61 = vcvt.f32.s32 %v1248_v57  ;;  %v247_v1 = vshll.u32 %v246_v46, 16 }
 0x216   :  { %v348_v5 = vsel %vm347_vm1, %v343_v9, inf  ;;  %v869_v14 = vpack.c.bf16 %v479_v12, %v478_v16  ;;  %844 = vmatprep.subr.bf16.mxu0 %v843_v20 }
 0x217   :  { %349 = vmin.xlane.f32.xlu1 %v348_v5  ;;  %v353_v8 = vshll.u32 %v352_v61, 16 }
 0x218   :  { %870 = vmatpush3.bf16.msra.mxu1 %v869_v14 }
 0x219   :  { %872 = vmatprep.subr.bf16.mxu1 %v871_v24  ;;  %846 = vmatpush3.bf16.msra.mxu0 %v845_v25 }
 0x21c   :  { %874 = vmatpush3.bf16.msra.mxu1 %v873_v28 }
 0x21d   :  { %876 = vmatprep.subr.bf16.mxu1 %v875_v33 }
 0x220   :  { %878 = vmatpush3.bf16.msra.mxu1 %v877_v34 }
 0x294   :  { %v230_v36 = vpop.xlane.xlu0 %229 }
 0x295   :  { %v231_v40 = vcvt.f32.s32 %v230_v36 }
 0x297   :  { %v234_v49 = vadd.s32 %v233_v41, %v231_v40 }
 0x298   :  { %v336_v51 = vpop.xlane.xlu1 %335  ;;  %v283_v52 = vpop.xlane.xlu0 %282 }
 0x299   :  { %v337_v59 = vcvt.f32.s32 %v336_v51  ;;  %v284_v47 = vcvt.f32.s32 %v283_v52  ;;  %vm249_vm5 = vcmp.eq.s32.totalorder %v1022_v48, %v234_v49  ;;  %v714_v51 = vld [vmem:[%s1365_s4] ss:$0 sm:$0xff] }
 0x29b   :  { %v340_v39 = vadd.s32 %v339_v58, %v337_v59  ;;  %v287_v63 = vadd.s32 %v286_v56, %v284_v47 }
 0x29c   :  { %v389_v0 = vpop.xlane.xlu1 %388 }
 0x29d   :  { %v417_v50 = vsel %vm416_vm2, %v234_v49, %v287_v63  ;;  %v390_v53 = vcvt.f32.s32 %v389_v0  ;;  %v297_v54 = vpop.xlane.xlu0 %296  ;;  %vm302_vm4 = vcmp.eq.s32.totalorder %v1022_v48, %v287_v63  ;;  %vm355_vm9 = vcmp.eq.s32.totalorder %v1022_v48, %v340_v39 }
 0x29e   :  { %v420_v11 = vsel %vm419_vm3, %v417_v50, %v340_v39  ;;  %v298_v7 = vcvt.f32.s32 %v297_v54  ;;  %715 = vmatprep.mubr.msk.f32.mxu0 %vm302_vm4, %v913_v10 }
 0x29f   :  { %v393_v9 = vadd.s32 %v392_v43, %v390_v53  ;;  %716 = vmatmul.mubr.msk.f32.vlgmr.msra.gmra.mrb[4].mxu0 %vm249_vm5, %v913_v10 }
 0x2a0   :  { %v301_v60 = vadd.s32 %v300_v3, %v298_v7  ;;  %v403_v55 = vpop.xlane.xlu1 %402 }
 0x2a1   :  { %v423_v13 = vsel %vm422_vm6, %v420_v11, %v393_v9  ;;  %v404_v15 = vcvt.f32.s32 %v403_v55  ;;  %v244_v62 = vpop.xlane.xlu0 %243  ;;  %vm408_vm8 = vcmp.eq.s32.totalorder %v1022_v48, %v393_v9 }
 0x2a2   :  { %426 = vst.msk [vmem:[%s1367_s6] sm:$0xff] %vm425_vm7, %v423_v13  ;;  %v245_v4 = vcvt.f32.s32 %v244_v62  ;;  %719 = vmatprep.mubr.msk.f32.mxu1 %vm408_vm8, %v913_v10  ;;  %vm303_vm10 = vcmp.eq.s32.totalorder %v1022_v48, %v301_v60 }
 0x2a3   :  { %v407_v5 = vadd.s32 %v406_v2, %v404_v15  ;;  %717 = vmatprep.mubr.msk.f32.mxu0 %vm303_vm10, %v913_v10  ;;  %720 = vmatmul.mubr.msk.f32.vlgmr.msra.gmra.mrb[4].mxu1 %vm355_vm9, %v913_v10 }
 0x2a4   :  { %v248_v57 = vadd.s32 %v247_v1, %v245_v4  ;;  %v350_v6 = vpop.xlane.xlu1 %349 }
 0x2a5   :  { %v351_v16 = vcvt.f32.s32 %v350_v6  ;;  %vm409_vm11 = vcmp.eq.s32.totalorder %v1022_v48, %v407_v5 }
 0x2a6   :  { %721 = vmatprep.mubr.msk.f32.mxu1 %vm409_vm11, %v913_v10  ;;  %vm250_vm12 = vcmp.eq.s32.totalorder %v1022_v48, %v248_v57  ;;  %v418_v14 = vsel %vm416_vm2, %v248_v57, %v301_v60 }
 0x2a7   :  { %v354_v12 = vadd.s32 %v353_v8, %v351_v16  ;;  %718 = vmatmul.mubr.msk.f32.gmra.mrb[6].mxu0 %vm250_vm12, %v913_v10 }
 0x2a9   :  { %v421_v17 = vsel %vm419_vm3, %v418_v14, %v354_v12  ;;  %vm356_vm13 = vcmp.eq.s32.totalorder %v1022_v48, %v354_v12 }
 0x2aa   :  { %v424_v18 = vsel %vm422_vm6, %v421_v17, %v407_v5  ;;  %722 = vmatmul.mubr.msk.f32.gmra.mrb[6].mxu1 %vm356_vm13, %v913_v10 }
 0x2ab   :  { %427 = vst.msk [vmem:[%s1367_s6 + $0x8] sm:$0xff] %vm425_vm7, %v424_v18 }
 0x372   :  { %v755_v19 = vpop.f32.mrb[4].mxu0 }
 0x373   :  { %v756_v20 = vpop.f32.mrb[5].mxu0 }
 0x374   :  { %v757_v21 = vadd.f32 %v756_v20, %v755_v19 }
 0x376   :  { %v793_v22 = vpop.f32.mrb[4].mxu1 }
 0x377   :  { %v794_v23 = vpop.f32.mrb[5].mxu1 }
 0x378   :  { %v795_v24 = vadd.f32 %v794_v23, %v793_v22 }
 0x37a   :  { %v642_v25 = vadd.f32 %v795_v24, %v757_v21  ;;  %v758_v26 = vpop.f32.mrb[6].mxu0 }
 0x37b   :  { %v759_v27 = vpop.f32.mrb[7].mxu0 }
 0x37c   :  { %v760_v28 = vadd.f32 %v759_v27, %v758_v26  ;;  %v650_v29 = vmul.f32 %v642_v25, %v642_v25 }
 0x37d   :  { %v796_v48 = vpop.f32.mrb[6].mxu1 }
 0x37e   :  { %v797_v30 = vpop.f32.mrb[7].mxu1  ;;  %v652_v31 = vsel %vm41_vm0, %v650_v29, 0.0 }
 0x37f   :  { %v798_v32 = vadd.f32 %v797_v30, %v796_v48  ;;  %653 = vadd.xlane.f32.xlu0 %v652_v31 }
 0x381   :  { %v647_v33 = vadd.f32 %v798_v32, %v760_v28 }
 0x383   :  { %v651_v34 = vmul.f32 %v647_v33, %v647_v33 }
 0x385   :  { %v655_v35 = vsel %vm41_vm0, %v651_v34, 0.0 }
 0x386   :  { %656 = vadd.xlane.f32.xlu1 %v655_v35 }
 0x40c   :  { %v654_v36 = vpop.xlane.xlu0 %653 }
 0x40d   :  { %v659_v37 = vmul.f32 0.03125, %v654_v36 }
 0x40f   :  { %v661_v38 = vadd.f32 1e-06, %v659_v37 }
 0x411   :  { %884 = vrsqrt.f32 %v661_v38 }
 0x413   :  { %v657_v40 = vpop.xlane.xlu1 %656 }
 0x414   :  { %v660_v41 = vmul.f32 0.03125, %v657_v40 }
 0x416   :  { %v662_v42 = vadd.f32 1e-06, %v660_v41 }
 0x418   :  { %886 = vrsqrt.f32 %v662_v42 }
 0x41b   :  { %v885_v45 = vpop.eup %884 }
 0x41c   :  { %v665_v52 = vmul.f32 %v885_v45, %v642_v25 }
 0x41e   :  { %v674_v58 = vmul.f32 %v714_v51, %v665_v52 }
 0x420   :  { %676 = vst.msk [vmem:[#allocation3] sm:$0xff] %vm41_vm0, %v674_v58 }
 0x422   :  { %v887_v56 = vpop.eup %886 }
 0x423   :  { %v666_v59 = vmul.f32 %v887_v56, %v647_v33 }
 0x425   :  { %v675_v47 = vmul.f32 %v714_v51, %v666_v59 }
 0x427   :  { %677 = vst.msk [vmem:[#allocation3 + $0x8] sm:$0xff] %vm41_vm0, %v675_v47 }
 0x428   :  { %899 = shalt.err (!%p896_p4)
}
 0x429   :  { %s900_s15 = scalar_lea.hbm %s1366_s5, 256 }
 0x42a   :  { %p901_p5 = scmp.ne.s32.totalorder %s1366_s5, %s900_s15  ;;  %p904_p6 = scmp.lt.u32.totalorder %s900_s15, %s1366_s5 }
 0x42c   :  { %p906_p7 = pnand %p904_p6, %p901_p5 }
 0x42e   :  { %909 = shalt.err (!%p906_p7)
}
 0x42f   :  { %s915_s20 = smov 128   ;;  %s916_s21 = smov 8  }
 0x430   :  { %689 = dma.vmem_to_hbm [thread:$0]  %s684_s0, 256, %s1366_s5, [#allocation4], %s915_s20, %s915_s20, %s916_s21  }
 0x431   :  { %910 = dma.done.wait [#allocation4], 256  }
 0x432   :  { %911 = vsyncadd [#allocation4], 4294967040 }
 0x433   :  { %697 = vsyncpa [#allocation4], 1 }

</bundles_post_ra>
